<compile_context>
chip_gen: v7x
topology: tpu7x:2x2x1
jax: 0.10.0
libtpu: 0.0.40
codegen_flags: <defaults>
</compile_context>

<pallas_src>
import jax
import jax.numpy as jnp
import numpy as np
from jax import lax
from jax.experimental import pallas as pl
from jax.experimental.pallas import tpu as pltpu

_EPS = 1e-5


def _make_kernel(N, H, W, C_in, C_mid, C_out, k, stride, padding):
    p = padding
    H1 = (H + 2 * p - k) // stride + 1
    W1 = (W + 2 * p - k) // stride + 1
    H2 = (H1 + 2 * p - k) + 1
    W2 = (W1 + 2 * p - k) + 1
    L_in = W * C_in            # lane width of the H-padded input slab
    L1 = W1 * C_mid            # lane width of the stage-1 output slab
    L2 = W2 * C_out            # lane width of the stage-2 output slab
    inv_cnt1 = 1.0 / float(N * H1 * W1)   # elements per channel (BN1)
    inv_cnt2 = 1.0 / float(N * H2 * W2)   # elements per channel (BN2)

    def batchnorm(h, proj_ref, gamma_ref, beta_ref, inv_cnt):
        # One-pass stats on the in-vreg value: per-lane sum / sum-of-squares, folded to
        # per-channel totals by a 0/1 projector matmul (MXU), applied as per-lane affine.
        proj = proj_ref[...]
        mean = jnp.dot(jnp.sum(h, axis=0, keepdims=True), proj,
                       preferred_element_type=jnp.float32) * inv_cnt
        ex2 = jnp.dot(jnp.sum(h * h, axis=0, keepdims=True), proj,
                      preferred_element_type=jnp.float32) * inv_cnt
        var = ex2 - mean * mean                       # biased (training-mode) variance
        scale = lax.rsqrt(var + _EPS) * gamma_ref[...]
        return (h - mean) * scale + beta_ref[...]

    def kernel(xh_ref, b1_ref, p1_ref, g1_ref, be1_ref,
               b2_ref, p2_ref, g2_ref, be2_ref, out_ref, pad_ref):
        # ---- stage 1: ReLU -> depthwise(k, stride) -> 1x1 -> BN -> ReLU --------------
        # zero H-halo rows commute with ReLU, so ReLU the H-padded slab directly.
        x = jnp.maximum(xh_ref[...], 0.0)              # (N, H+2p, W*C_in), lane-dense

        acc1 = jnp.zeros((N * H1, L1), jnp.float32)
        for i in range(k):                              # k fused (dw+pw) matmuls
            if stride == 1:
                xi = x[:, i:i + H1, :]
            else:
                # TODO(synk): H-strided slice may force a sublane relayout; if stride>1
                # shapes become hot, move the stride into the row DMA / a post-select.
                xi = lax.slice(x, (0, i, 0),
                               (N, i + (H1 - 1) * stride + 1, L_in),
                               (1, stride, 1))
            acc1 = acc1 + jnp.dot(xi.reshape(N * H1, L_in), b1_ref[i],
                                  preferred_element_type=jnp.float32)

        h1 = jnp.maximum(batchnorm(acc1, p1_ref, g1_ref, be1_ref, inv_cnt1), 0.0)

        # ---- H halo for stage 2: zero only the halo rows, store the interior once ----
        if p > 0:
            zero_rows = jnp.zeros((N, p, L1), jnp.float32)
            pad_ref[:, 0:p, :] = zero_rows
            pad_ref[:, p + H1:p + H1 + p, :] = zero_rows
        pad_ref[:, p:p + H1, :] = h1.reshape(N, H1, L1)

        # ---- stage 2: depthwise(k, 1) -> 1x1 -> BN ------------------------------------
        x2 = pad_ref[...]                               # (N, H1+2p, W1*C_mid)
        acc2 = jnp.zeros((N * H2, L2), jnp.float32)
        for i in range(k):
            acc2 = acc2 + jnp.dot(x2[:, i:i + H2, :].reshape(N * H2, L1), b2_ref[i],
                                  preferred_element_type=jnp.float32)

        # lane-dense (N*H2, W2*C_out) store: full 128-lane writes, no masking.
        out_ref[...] = batchnorm(acc2, p2_ref, g2_ref, be2_ref, inv_cnt2)

    return kernel, (H1, W1, H2, W2, L1, L2)


def _band_weights(dw, pw, W_in, stride, p):
    """Fuse depthwise dw (k,k,C_in) and pointwise pw (C_in,C_out) into k banded
    lane-space matrices B[i] of shape (W_in*C_in, W_out*C_out), absorbing the W
    zero-padding and W stride into the band structure (weight prep, done once)."""
    k = dw.shape[0]
    C_in = dw.shape[2]
    C_out = pw.shape[1]
    W_out = (W_in + 2 * p - k) // stride + 1
    sel = np.zeros((k, W_in, W_out), np.float32)
    for j in range(k):
        for wo in range(W_out):
            ws = wo * stride + j - p
            if 0 <= ws < W_in:
                sel[j, ws, wo] = 1.0
    # B[i, ws*C_in + c, wo*C_out + d] = sum_j sel[j, ws, wo] * dw[i, j, c] * pw[c, d]
    B = jnp.einsum("jsw,ijc,cd->iscwd", jnp.asarray(sel), dw, pw)
    return B.reshape(k, W_in * C_in, W_out * C_out)


def _bn_lane_params(gamma, beta, C, W_out):
    """Per-channel BN affine tiled to the (w, c) lane axis + a 0/1 projector P with
    P[p,q] = 1 iff lane p and lane q carry the same channel (per-channel pooling)."""
    L = W_out * C
    lane_c = np.arange(L) % C
    P = (lane_c[:, None] == lane_c[None, :]).astype(np.float32)
    g_lane = jnp.tile(jnp.reshape(gamma, (1, C)), (1, W_out))
    b_lane = jnp.tile(jnp.reshape(beta, (1, C)), (1, W_out))
    return jnp.asarray(P), g_lane, b_lane


def _padded_f32_bytes(shape):
    s = list(shape)
    if len(s) == 1:
        s = [1] + s
    s[-1] = -(-s[-1] // 128) * 128
    s[-2] = -(-s[-2] // 8) * 8
    n = 4
    for d in s:
        n *= int(d)
    return n


def sep_conv(x_nchw, params, kernel_size, stride, padding):
    """SepConv forward. x_nchw: (N, C_in, H, W) float32. Returns (N, C_out, H2, W2)."""
    N, C_in, H, W = x_nchw.shape
    dw1, pw1, g1, b1, dw2, pw2, g2, b2 = params
    C_mid = pw1.shape[1]
    C_out = pw2.shape[1]
    k, p = kernel_size, padding

    kernel, (H1, W1, H2, W2, L1, L2) = _make_kernel(
        N, H, W, C_in, C_mid, C_out, k, stride, p)

    # --- static weight prep (once): fused banded conv matrices + BN lane helpers ------
    B1 = _band_weights(dw1, pw1, W, stride, p)          # (k, W*C_in,   W1*C_mid)
    B2 = _band_weights(dw2, pw2, W1, 1, p)              # (k, W1*C_mid, W2*C_out)
    P1, g1l, b1l = _bn_lane_params(g1, b1, C_mid, W1)
    P2, g2l, b2l = _bn_lane_params(g2, b2, C_out, W2)

    # --- input glue: NCHW -> (N, H+2p, W*C_in); W padding is folded into B1 -----------
    x_nhwc = jnp.transpose(x_nchw, (0, 2, 3, 1)).astype(jnp.float32)
    xh = jnp.pad(x_nhwc, ((0, 0), (p, p), (0, 0), (0, 0))).reshape(N, H + 2 * p, W * C_in)

    vmem = pl.BlockSpec(memory_space=pltpu.MemorySpace.VMEM)
    operands = (xh, B1, P1, g1l, b1l, B2, P2, g2l, b2l)
    scratch = pltpu.VMEM((N, H1 + 2 * p, L1), jnp.float32)

    est = (2 * sum(_padded_f32_bytes(a.shape) for a in operands)
           + 2 * _padded_f32_bytes((N * H2, L2))
           + _padded_f32_bytes((N, H1 + 2 * p, L1)))
    vmem_limit = int(min(48 * 1024 * 1024, max(8 * 1024 * 1024, 4 * est)))

    out2d = pl.pallas_call(
        kernel,
        out_shape=jax.ShapeDtypeStruct((N * H2, L2), jnp.float32),
        in_specs=[vmem] * len(operands),
        out_specs=vmem,
        scratch_shapes=[scratch],
        compiler_params=pltpu.CompilerParams(vmem_limit_bytes=vmem_limit),
    )(*operands)

    # --- output glue: lane-dense (N*H2, W2*C_out) slab -> NCHW -------------------------
    return jnp.transpose(out2d.reshape(N, H2, W2, C_out), (0, 3, 1, 2))


def _ref_sepconv(x, params, k, stride, padding):
    """Pure-JAX reference (XLA convs) matching the PyTorch module's forward."""
    dw1, pw1, g1, b1, dw2, pw2, g2, b2 = params
    eps = _EPS

    def dwconv(h, w_kkc, s):
        w = jnp.transpose(w_kkc, (2, 0, 1))[:, None, :, :]            # (C,1,k,k) OIHW
        return lax.conv_general_dilated(h, w, (s, s), [(padding, padding)] * 2,
                                        feature_group_count=h.shape[1],
                                        dimension_numbers=('NCHW', 'OIHW', 'NCHW'))

    def pwconv(h, w_ci_co):
        w = jnp.transpose(w_ci_co)[:, :, None, None]                   # (Co,Ci,1,1) OIHW
        return lax.conv_general_dilated(h, w, (1, 1), [(0, 0)] * 2,
                                        dimension_numbers=('NCHW', 'OIHW', 'NCHW'))

    def bn(h, g, b):
        mean = jnp.mean(h, axis=(0, 2, 3), keepdims=True)
        var = jnp.mean((h - mean) ** 2, axis=(0, 2, 3), keepdims=True)
        return (h - mean) * lax.rsqrt(var + eps) * g.reshape(1, -1, 1, 1) + b.reshape(1, -1, 1, 1)

    h = jnp.maximum(x, 0.0)
    h = dwconv(h, dw1, stride)
    h = pwconv(h, pw1)
    h = jnp.maximum(bn(h, g1, b1), 0.0)
    h = dwconv(h, dw2, 1)
    h = pwconv(h, pw2)
    return bn(h, g2, b2)


if __name__ == "__main__":
    # SepConv(C_in=4, C_out=8, kernel_size=3, stride=1, padding=1, affine=True)
    N, C_in, C_out, H, W = 2, 4, 8, 16, 16
    k, stride, padding = 3, 1, 1

    key = jax.random.PRNGKey(0)
    k1, k2, k3, k4, kx = jax.random.split(key, 5)

    dw1 = 0.2 * jax.random.normal(k1, (k, k, C_in), jnp.float32)       # depthwise #1 (k,k,C_in)
    pw1 = 0.2 * jax.random.normal(k2, (C_in, C_in), jnp.float32)       # 1x1 conv #1  (C_in, C_in)
    g1 = jnp.ones((1, C_in), jnp.float32)                               # BN1 gamma (PyTorch init)
    b1 = jnp.zeros((1, C_in), jnp.float32)                              # BN1 beta
    dw2 = 0.2 * jax.random.normal(k3, (k, k, C_in), jnp.float32)       # depthwise #2
    pw2 = 0.2 * jax.random.normal(k4, (C_in, C_out), jnp.float32)      # 1x1 conv #2  (C_in, C_out)
    g2 = jnp.ones((1, C_out), jnp.float32)                              # BN2 gamma
    b2 = jnp.zeros((1, C_out), jnp.float32)                             # BN2 beta
    params = (dw1, pw1, g1, b1, dw2, pw2, g2, b2)

    x = jax.random.normal(kx, (N, C_in, H, W), jnp.float32)

    out = jax.block_until_ready(sep_conv(x, params, k, stride, padding))
    ref = jax.block_until_ready(_ref_sepconv(x, params, k, stride, padding))
    assert out.shape == ref.shape, (out.shape, ref.shape)
    np.testing.assert_allclose(np.asarray(out), np.asarray(ref), rtol=1e-4, atol=1e-4)

    # TODO(synk): nn.BatchNorm2d also updates running_mean/running_var in training mode
    # (a stateful side effect that does not influence the returned tensor); not modeled.
    print("KERNEL_OK")
</pallas_src>

<mosaic_0001>
module attributes {stable_mosaic.version = 11 : i64} {
  func.func @kernel(%arg0: memref<2x18x64xf32, #tpu.memory_space<vmem>>, %arg1: memref<3x64x64xf32, #tpu.memory_space<vmem>>, %arg2: memref<64x64xf32, #tpu.memory_space<vmem>>, %arg3: memref<1x64xf32, #tpu.memory_space<vmem>>, %arg4: memref<1x64xf32, #tpu.memory_space<vmem>>, %arg5: memref<3x64x128xf32, #tpu.memory_space<vmem>>, %arg6: memref<128x128xf32, #tpu.memory_space<vmem>>, %arg7: memref<1x128xf32, #tpu.memory_space<vmem>>, %arg8: memref<1x128xf32, #tpu.memory_space<vmem>>, %arg9: memref<32x128xf32, #tpu.memory_space<vmem>>, %arg10: memref<2x18x64xf32, #tpu.memory_space<vmem>>) attributes {dimension_semantics = [], scalar_prefetch = 0 : i64, scratch_operands = 1 : i64, tpu.core_type = #tpu.core_type<tc>} {
    %c0 = arith.constant 0 : index
    %c0_0 = arith.constant 0 : index
    %c0_1 = arith.constant 0 : index
    %0 = vector.load %arg0[%c0, %c0_0, %c0_1] : memref<2x18x64xf32, #tpu.memory_space<vmem>>, vector<2x18x64xf32>
    %cst = arith.constant 0.000000e+00 : f32
    %1 = vector.broadcast %cst : f32 to vector<2x18x64xf32>
    %2 = arith.maximumf %0, %1 : vector<2x18x64xf32>
    %cst_2 = arith.constant 0.000000e+00 : f32
    %3 = vector.broadcast %cst_2 : f32 to vector<32x64xf32>
    %4 = vector.extract_strided_slice %2 {offsets = [0, 0, 0], sizes = [2, 16, 64], strides = [1, 1, 1]} : vector<2x18x64xf32> to vector<2x16x64xf32>
    %5 = vector.shape_cast %4 : vector<2x16x64xf32> to vector<32x64xf32>
    %c0_3 = arith.constant 0 : index
    %c0_4 = arith.constant 0 : index
    %c0_5 = arith.constant 0 : index
    %6 = vector.load %arg1[%c0_3, %c0_4, %c0_5] : memref<3x64x64xf32, #tpu.memory_space<vmem>>, vector<1x64x64xf32>
    %7 = vector.shape_cast %6 : vector<1x64x64xf32> to vector<64x64xf32>
    %cst_6 = arith.constant dense<0.000000e+00> : vector<32x64xf32>
    %8 = tpu.matmul %5, %7, %cst_6 {dimension_numbers = #tpu.dot_dimension_numbers<[1], [0], [0], [1], [0, 0, 1, 1], [], []>} : vector<32x64xf32>, vector<64x64xf32>, vector<32x64xf32> -> vector<32x64xf32>
    %9 = arith.addf %3, %8 : vector<32x64xf32>
    %10 = vector.extract_strided_slice %2 {offsets = [0, 1, 0], sizes = [2, 16, 64], strides = [1, 1, 1]} : vector<2x18x64xf32> to vector<2x16x64xf32>
    %11 = vector.shape_cast %10 : vector<2x16x64xf32> to vector<32x64xf32>
    %c1 = arith.constant 1 : index
    %c0_7 = arith.constant 0 : index
    %c0_8 = arith.constant 0 : index
    %12 = vector.load %arg1[%c1, %c0_7, %c0_8] : memref<3x64x64xf32, #tpu.memory_space<vmem>>, vector<1x64x64xf32>
    %13 = vector.shape_cast %12 : vector<1x64x64xf32> to vector<64x64xf32>
    %cst_9 = arith.constant dense<0.000000e+00> : vector<32x64xf32>
    %14 = tpu.matmul %11, %13, %cst_9 {dimension_numbers = #tpu.dot_dimension_numbers<[1], [0], [0], [1], [0, 0, 1, 1], [], []>} : vector<32x64xf32>, vector<64x64xf32>, vector<32x64xf32> -> vector<32x64xf32>
    %15 = arith.addf %9, %14 : vector<32x64xf32>
    %16 = vector.extract_strided_slice %2 {offsets = [0, 2, 0], sizes = [2, 16, 64], strides = [1, 1, 1]} : vector<2x18x64xf32> to vector<2x16x64xf32>
    %17 = vector.shape_cast %16 : vector<2x16x64xf32> to vector<32x64xf32>
    %c2 = arith.constant 2 : index
    %c0_10 = arith.constant 0 : index
    %c0_11 = arith.constant 0 : index
    %18 = vector.load %arg1[%c2, %c0_10, %c0_11] : memref<3x64x64xf32, #tpu.memory_space<vmem>>, vector<1x64x64xf32>
    %19 = vector.shape_cast %18 : vector<1x64x64xf32> to vector<64x64xf32>
    %cst_12 = arith.constant dense<0.000000e+00> : vector<32x64xf32>
    %20 = tpu.matmul %17, %19, %cst_12 {dimension_numbers = #tpu.dot_dimension_numbers<[1], [0], [0], [1], [0, 0, 1, 1], [], []>} : vector<32x64xf32>, vector<64x64xf32>, vector<32x64xf32> -> vector<32x64xf32>
    %21 = arith.addf %15, %20 : vector<32x64xf32>
    %c0_13 = arith.constant 0 : index
    %c0_14 = arith.constant 0 : index
    %22 = vector.load %arg2[%c0_13, %c0_14] : memref<64x64xf32, #tpu.memory_space<vmem>>, vector<64x64xf32>
    %cst_15 = arith.constant dense<0.000000e+00> : vector<64xf32>
    %23 = vector.multi_reduction <add>, %21, %cst_15 [0] : vector<32x64xf32> to vector<64xf32>
    %24 = vector.shape_cast %23 : vector<64xf32> to vector<1x64xf32>
    %cst_16 = arith.constant dense<0.000000e+00> : vector<1x64xf32>
    %25 = tpu.matmul %24, %22, %cst_16 {dimension_numbers = #tpu.dot_dimension_numbers<[1], [0], [0], [1], [0, 0, 1, 1], [], []>} : vector<1x64xf32>, vector<64x64xf32>, vector<1x64xf32> -> vector<1x64xf32>
    %cst_17 = arith.constant 0.001953125 : f32
    %26 = vector.broadcast %cst_17 : f32 to vector<1x64xf32>
    %27 = arith.mulf %25, %26 : vector<1x64xf32>
    %28 = arith.mulf %21, %21 : vector<32x64xf32>
    %cst_18 = arith.constant dense<0.000000e+00> : vector<64xf32>
    %29 = vector.multi_reduction <add>, %28, %cst_18 [0] : vector<32x64xf32> to vector<64xf32>
    %30 = vector.shape_cast %29 : vector<64xf32> to vector<1x64xf32>
    %cst_19 = arith.constant dense<0.000000e+00> : vector<1x64xf32>
    %31 = tpu.matmul %30, %22, %cst_19 {dimension_numbers = #tpu.dot_dimension_numbers<[1], [0], [0], [1], [0, 0, 1, 1], [], []>} : vector<1x64xf32>, vector<64x64xf32>, vector<1x64xf32> -> vector<1x64xf32>
    %cst_20 = arith.constant 0.001953125 : f32
    %32 = vector.broadcast %cst_20 : f32 to vector<1x64xf32>
    %33 = arith.mulf %31, %32 : vector<1x64xf32>
    %34 = arith.mulf %27, %27 : vector<1x64xf32>
    %35 = arith.subf %33, %34 : vector<1x64xf32>
    %cst_21 = arith.constant 9.99999974E-6 : f32
    %36 = vector.broadcast %cst_21 : f32 to vector<1x64xf32>
    %37 = arith.addf %35, %36 : vector<1x64xf32>
    %38 = math.rsqrt %37 : vector<1x64xf32>
    %c0_22 = arith.constant 0 : index
    %c0_23 = arith.constant 0 : index
    %39 = vector.load %arg3[%c0_22, %c0_23] : memref<1x64xf32, #tpu.memory_space<vmem>>, vector<1x64xf32>
    %40 = arith.mulf %38, %39 : vector<1x64xf32>
    %41 = vector.broadcast %27 : vector<1x64xf32> to vector<32x64xf32>
    %42 = arith.subf %21, %41 : vector<32x64xf32>
    %43 = vector.broadcast %40 : vector<1x64xf32> to vector<32x64xf32>
    %44 = arith.mulf %42, %43 : vector<32x64xf32>
    %c0_24 = arith.constant 0 : index
    %c0_25 = arith.constant 0 : index
    %45 = vector.load %arg4[%c0_24, %c0_25] : memref<1x64xf32, #tpu.memory_space<vmem>>, vector<1x64xf32>
    %46 = vector.broadcast %45 : vector<1x64xf32> to vector<32x64xf32>
    %47 = arith.addf %44, %46 : vector<32x64xf32>
    %cst_26 = arith.constant 0.000000e+00 : f32
    %48 = vector.broadcast %cst_26 : f32 to vector<32x64xf32>
    %49 = arith.maximumf %47, %48 : vector<32x64xf32>
    %cst_27 = arith.constant 0.000000e+00 : f32
    %50 = vector.broadcast %cst_27 : f32 to vector<2x1x64xf32>
    %c0_28 = arith.constant 0 : index
    %c0_29 = arith.constant 0 : index
    %c0_30 = arith.constant 0 : index
    %51 = vector.load %arg10[%c0_28, %c0_29, %c0_30] : memref<2x18x64xf32, #tpu.memory_space<vmem>>, vector<2x1x64xf32>
    tpu.vector_store %arg10[%c0_28, %c0_29, %c0_30], %50 {strides = array<i32>} : memref<2x18x64xf32, #tpu.memory_space<vmem>>, vector<2x1x64xf32>,
    %c0_31 = arith.constant 0 : index
    %c17 = arith.constant 17 : index
    %c0_32 = arith.constant 0 : index
    %52 = vector.load %arg10[%c0_31, %c17, %c0_32] : memref<2x18x64xf32, #tpu.memory_space<vmem>>, vector<2x1x64xf32>
    tpu.vector_store %arg10[%c0_31, %c17, %c0_32], %50 {strides = array<i32>} : memref<2x18x64xf32, #tpu.memory_space<vmem>>, vector<2x1x64xf32>,
    %53 = vector.shape_cast %49 : vector<32x64xf32> to vector<2x16x64xf32>
    %c0_33 = arith.constant 0 : index
    %c1_34 = arith.constant 1 : index
    %c0_35 = arith.constant 0 : index
    %54 = vector.load %arg10[%c0_33, %c1_34, %c0_35] : memref<2x18x64xf32, #tpu.memory_space<vmem>>, vector<2x16x64xf32>
    tpu.vector_store %arg10[%c0_33, %c1_34, %c0_35], %53 {strides = array<i32>} : memref<2x18x64xf32, #tpu.memory_space<vmem>>, vector<2x16x64xf32>,
    %c0_36 = arith.constant 0 : index
    %c0_37 = arith.constant 0 : index
    %c0_38 = arith.constant 0 : index
    %55 = vector.load %arg10[%c0_36, %c0_37, %c0_38] : memref<2x18x64xf32, #tpu.memory_space<vmem>>, vector<2x18x64xf32>
    %cst_39 = arith.constant 0.000000e+00 : f32
    %56 = vector.broadcast %cst_39 : f32 to vector<32x128xf32>
    %57 = vector.extract_strided_slice %55 {offsets = [0, 0, 0], sizes = [2, 16, 64], strides = [1, 1, 1]} : vector<2x18x64xf32> to vector<2x16x64xf32>
    %58 = vector.shape_cast %57 : vector<2x16x64xf32> to vector<32x64xf32>
    %c0_40 = arith.constant 0 : index
    %c0_41 = arith.constant 0 : index
    %c0_42 = arith.constant 0 : index
    %59 = vector.load %arg5[%c0_40, %c0_41, %c0_42] : memref<3x64x128xf32, #tpu.memory_space<vmem>>, vector<1x64x128xf32>
    %60 = vector.shape_cast %59 : vector<1x64x128xf32> to vector<64x128xf32>
    %cst_43 = arith.constant dense<0.000000e+00> : vector<32x128xf32>
    %61 = tpu.matmul %58, %60, %cst_43 {dimension_numbers = #tpu.dot_dimension_numbers<[1], [0], [0], [1], [0, 0, 1, 1], [], []>} : vector<32x64xf32>, vector<64x128xf32>, vector<32x128xf32> -> vector<32x128xf32>
    %62 = arith.addf %56, %61 : vector<32x128xf32>
    %63 = vector.extract_strided_slice %55 {offsets = [0, 1, 0], sizes = [2, 16, 64], strides = [1, 1, 1]} : vector<2x18x64xf32> to vector<2x16x64xf32>
    %64 = vector.shape_cast %63 : vector<2x16x64xf32> to vector<32x64xf32>
    %c1_44 = arith.constant 1 : index
    %c0_45 = arith.constant 0 : index
    %c0_46 = arith.constant 0 : index
    %65 = vector.load %arg5[%c1_44, %c0_45, %c0_46] : memref<3x64x128xf32, #tpu.memory_space<vmem>>, vector<1x64x128xf32>
    %66 = vector.shape_cast %65 : vector<1x64x128xf32> to vector<64x128xf32>
    %cst_47 = arith.constant dense<0.000000e+00> : vector<32x128xf32>
    %67 = tpu.matmul %64, %66, %cst_47 {dimension_numbers = #tpu.dot_dimension_numbers<[1], [0], [0], [1], [0, 0, 1, 1], [], []>} : vector<32x64xf32>, vector<64x128xf32>, vector<32x128xf32> -> vector<32x128xf32>
    %68 = arith.addf %62, %67 : vector<32x128xf32>
    %69 = vector.extract_strided_slice %55 {offsets = [0, 2, 0], sizes = [2, 16, 64], strides = [1, 1, 1]} : vector<2x18x64xf32> to vector<2x16x64xf32>
    %70 = vector.shape_cast %69 : vector<2x16x64xf32> to vector<32x64xf32>
    %c2_48 = arith.constant 2 : index
    %c0_49 = arith.constant 0 : index
    %c0_50 = arith.constant 0 : index
    %71 = vector.load %arg5[%c2_48, %c0_49, %c0_50] : memref<3x64x128xf32, #tpu.memory_space<vmem>>, vector<1x64x128xf32>
    %72 = vector.shape_cast %71 : vector<1x64x128xf32> to vector<64x128xf32>
    %cst_51 = arith.constant dense<0.000000e+00> : vector<32x128xf32>
    %73 = tpu.matmul %70, %72, %cst_51 {dimension_numbers = #tpu.dot_dimension_numbers<[1], [0], [0], [1], [0, 0, 1, 1], [], []>} : vector<32x64xf32>, vector<64x128xf32>, vector<32x128xf32> -> vector<32x128xf32>
    %74 = arith.addf %68, %73 : vector<32x128xf32>
    %c0_52 = arith.constant 0 : index
    %c0_53 = arith.constant 0 : index
    %75 = vector.load %arg6[%c0_52, %c0_53] : memref<128x128xf32, #tpu.memory_space<vmem>>, vector<128x128xf32>
    %cst_54 = arith.constant dense<0.000000e+00> : vector<128xf32>
    %76 = vector.multi_reduction <add>, %74, %cst_54 [0] : vector<32x128xf32> to vector<128xf32>
    %77 = vector.shape_cast %76 : vector<128xf32> to vector<1x128xf32>
    %cst_55 = arith.constant dense<0.000000e+00> : vector<1x128xf32>
    %78 = tpu.matmul %77, %75, %cst_55 {dimension_numbers = #tpu.dot_dimension_numbers<[1], [0], [0], [1], [0, 0, 1, 1], [], []>} : vector<1x128xf32>, vector<128x128xf32>, vector<1x128xf32> -> vector<1x128xf32>
    %cst_56 = arith.constant 0.001953125 : f32
    %79 = vector.broadcast %cst_56 : f32 to vector<1x128xf32>
    %80 = arith.mulf %78, %79 : vector<1x128xf32>
    %81 = arith.mulf %74, %74 : vector<32x128xf32>
    %cst_57 = arith.constant dense<0.000000e+00> : vector<128xf32>
    %82 = vector.multi_reduction <add>, %81, %cst_57 [0] : vector<32x128xf32> to vector<128xf32>
    %83 = vector.shape_cast %82 : vector<128xf32> to vector<1x128xf32>
    %cst_58 = arith.constant dense<0.000000e+00> : vector<1x128xf32>
    %84 = tpu.matmul %83, %75, %cst_58 {dimension_numbers = #tpu.dot_dimension_numbers<[1], [0], [0], [1], [0, 0, 1, 1], [], []>} : vector<1x128xf32>, vector<128x128xf32>, vector<1x128xf32> -> vector<1x128xf32>
    %cst_59 = arith.constant 0.001953125 : f32
    %85 = vector.broadcast %cst_59 : f32 to vector<1x128xf32>
    %86 = arith.mulf %84, %85 : vector<1x128xf32>
    %87 = arith.mulf %80, %80 : vector<1x128xf32>
    %88 = arith.subf %86, %87 : vector<1x128xf32>
    %cst_60 = arith.constant 9.99999974E-6 : f32
    %89 = vector.broadcast %cst_60 : f32 to vector<1x128xf32>
    %90 = arith.addf %88, %89 : vector<1x128xf32>
    %91 = math.rsqrt %90 : vector<1x128xf32>
    %c0_61 = arith.constant 0 : index
    %c0_62 = arith.constant 0 : index
    %92 = vector.load %arg7[%c0_61, %c0_62] : memref<1x128xf32, #tpu.memory_space<vmem>>, vector<1x128xf32>
    %93 = arith.mulf %91, %92 : vector<1x128xf32>
    %94 = vector.broadcast %80 : vector<1x128xf32> to vector<32x128xf32>
    %95 = arith.subf %74, %94 : vector<32x128xf32>
    %96 = vector.broadcast %93 : vector<1x128xf32> to vector<32x128xf32>
    %97 = arith.mulf %95, %96 : vector<32x128xf32>
    %c0_63 = arith.constant 0 : index
    %c0_64 = arith.constant 0 : index
    %98 = vector.load %arg8[%c0_63, %c0_64] : memref<1x128xf32, #tpu.memory_space<vmem>>, vector<1x128xf32>
    %99 = vector.broadcast %98 : vector<1x128xf32> to vector<32x128xf32>
    %100 = arith.addf %97, %99 : vector<32x128xf32>
    %c0_65 = arith.constant 0 : index
    %c0_66 = arith.constant 0 : index
    %101 = vector.load %arg9[%c0_65, %c0_66] : memref<32x128xf32, #tpu.memory_space<vmem>>, vector<32x128xf32>
    tpu.vector_store %arg9[%c0_65, %c0_66], %100 {strides = array<i32>} : memref<32x128xf32, #tpu.memory_space<vmem>>, vector<32x128xf32>,
    return
  }
}

</mosaic_0001>

<bundles_post_ra>
// kernel: tpu_custom_call.1
= control target key start
LH: loop header
LB: loop body
LE: loop exit
PB: predicated region body
PF: predicated region fallthrough
CT: control target
= control target key end

     0   :  { %14 = vsyncpa [#allocation4], 0  ;;  %s2290_s0 = inlined_call_operand.vmem [shape: f32[2,18,64], index: 0, kind: input, shape index: {}]   ;;  %s2291_s1 = inlined_call_operand.hbm [shape: f32[3,64,64], index: 1, kind: input, shape index: {}]   ;;  %s2292_s2 = inlined_call_operand.vmem [shape: f32[64,64], index: 2, kind: input, shape index: {}]   ;;  %s2293_s3 = inlined_call_operand.vmem [shape: f32[1,64], index: 3, kind: input, shape index: {}]   ;;  %s2294_s4 = inlined_call_operand.vmem [shape: f32[1,64], index: 4, kind: input, shape index: {}]   ;;  %s2295_s5 = inlined_call_operand.hbm [shape: f32[3,64,128], index: 5, kind: input, shape index: {}]   ;;  %s2296_s6 = inlined_call_operand.hbm [shape: f32[128,128], index: 6, kind: input, shape index: {}]   ;;  %s2297_s7 = inlined_call_operand.vmem [shape: f32[1,128], index: 7, kind: input, shape index: {}]   ;;  %s2298_s8 = inlined_call_operand.vmem [shape: f32[1,128], index: 8, kind: input, shape index: {}]   ;;  %s2299_s9 = inlined_call_operand.hbm [shape: f32[32,128], index: 9, kind: output, shape index: {}]  }
   0x1   :  { %15 = vsyncpa [#allocation7], 0 }
   0x2   :  { %16 = vsyncpa [#allocation5], 0  ;;  %s1915_s30 = smov [#allocation6]   ;;  %s1916_s11 = smov [#allocation3]  }
   0x3   :  { %s42_s10 = sshll.u32 %s1915_s30, 4  ;;  %s24_s12 = sshll.u32 %s1916_s11, 4  ;;  %s43_s10 = int_to_ptr.vmem [resolvable:$true] %s42_s10  ;;  %s1974_s12 = int_to_ptr.vmem [resolvable:$true] %s24_s12 }
   0x4   :  { %s1821_s15 = scalar_lea.hbm %s2295_s5, 3072 }
   0x5   :  { %p1822_p0 = scmp.ne.s32.totalorder %s2295_s5, %s1821_s15  ;;  %p1825_p1 = scmp.lt.u32.totalorder %s1821_s15, %s2295_s5 }
   0x7   :  { %p1827_p2 = pnand %p1825_p1, %p1822_p0 }
   0x9   :  { %1830 = shalt.err (!%p1827_p2)
}
   0xa   :  { %s1831_s20 = scalar_lea.vmem %s43_s10, 3072  ;;  %p1836_p4 = scmp.lt.s32.totalorder %s43_s10, %s43_s10 }
   0xb   :  { %p1832_p3 = scmp.ne.s32.totalorder %s43_s10, %s1831_s20  ;;  %p1837_p5 = scmp.lt.s32.totalorder %s1831_s20, %s1831_s20 }
   0xd   :  { %p1838_p6 = por %p1837_p5, %p1836_p4 }
   0xf   :  { %p1839_p7 = pnand %p1838_p6, %p1832_p3 }
  0x11   :  { %1842 = shalt.err (!%p1839_p7)
}
  0x12   :  { %s1917_s21 = smov 128   ;;  %s1918_s22 = smov 8  }
  0x13   :  { %48 = dma.hbm_to_vmem [thread:$0]  %s2295_s5, 3072, %s43_s10, [#allocation7], %s1917_s21, %s1917_s21, %s1918_s22  }
  0x14   :  { %s1843_s27 = scalar_lea.hbm %s2291_s1, 3072 }
  0x15   :  { %p1844_p8 = scmp.ne.s32.totalorder %s2291_s1, %s1843_s27  ;;  %p1847_p9 = scmp.lt.u32.totalorder %s1843_s27, %s2291_s1 }
  0x17   :  { %p1849_p10 = pnand %p1847_p9, %p1844_p8 }
  0x19   :  { %1852 = shalt.err (!%p1849_p10)
}
  0x1a   :  { %s1853_s13 = scalar_lea.vmem %s1974_s12, 3072  ;;  %p1858_p12 = scmp.lt.s32.totalorder %s1974_s12, %s1974_s12 }
  0x1b   :  { %p1854_p11 = scmp.ne.s32.totalorder %s1974_s12, %s1853_s13  ;;  %p1859_p13 = scmp.lt.s32.totalorder %s1853_s13, %s1853_s13 }
  0x1d   :  { %p1860_p0 = por %p1859_p13, %p1858_p12 }
  0x1f   :  { %p1861_p1 = pnand %p1860_p0, %p1854_p11 }
  0x21   :  { %1864 = shalt.err (!%p1861_p1)
}
  0x22   :  { %30 = dma.hbm_to_vmem [thread:$0]  %s2291_s1, 3072, %s1974_s12, [#allocation4], %s1917_s21, %s1917_s21, %s1918_s22  }
  0x23   :  { %s1919_s14 = smov [#allocation8]   ;;  %s1865_s18 = scalar_lea.hbm %s2296_s6, 2048 }
  0x24   :  { %s54_s15 = sshll.u32 %s1919_s14, 4  ;;  %p1866_p2 = scmp.ne.s32.totalorder %s2296_s6, %s1865_s18  ;;  %s55_s15 = int_to_ptr.vmem [resolvable:$true] %s54_s15 }
  0x25   :  { %p1869_p3 = scmp.lt.u32.totalorder %s1865_s18, %s2296_s6 }
  0x27   :  { %p1871_p4 = pnand %p1869_p3, %p1866_p2 }
  0x29   :  { %1874 = shalt.err (!%p1871_p4)
}
  0x2a   :  { %s1875_s25 = scalar_lea.vmem %s55_s15, 2048  ;;  %p1880_p6 = scmp.lt.s32.totalorder %s55_s15, %s55_s15 }
  0x2b   :  { %p1876_p5 = scmp.ne.s32.totalorder %s55_s15, %s1875_s25  ;;  %p1881_p7 = scmp.lt.s32.totalorder %s1875_s25, %s1875_s25 }
  0x2d   :  { %p1882_p8 = por %p1881_p7, %p1880_p6 }
  0x2f   :  { %p1883_p9 = pnand %p1882_p8, %p1876_p5 }
  0x31   :  { %1886 = shalt.err (!%p1883_p9)
}
  0x32   :  { %60 = dma.hbm_to_vmem [thread:$0]  %s2296_s6, 2048, %s55_s15, [#allocation7], %s1917_s21, %s1917_s21, %s1918_s22  }
  0x33   :  { %1909 = dma.done.wait [#allocation4], 3072  }
  0x34   :  { %1910 = vsyncadd [#allocation4], 4294964224 }
  0x35   :  { %1911 = dma.done.wait [#allocation7], 5120  }
  0x36   :  { %1912 = vsyncadd [#allocation7], 4294962176  ;;  %v86_v0 = vld [vmem:[#allocation3] sm:$0xff]  ;;  %v87_v1 = vld [vmem:[#allocation3 + $0x8] sm:$0xff]  ;;  %vm120_vm0 = vcmask 523264   ;;  %vm100_vm1 = vcmask 1046528  }
  0x37   :  { %v88_v2 = vld [vmem:[#allocation3 + $0x10] sm:$0xff]  ;;  %v1640_v3 = vpack.c.bf16 %v87_v1, %v86_v0  ;;  %v89_v4 = vld [vmem:[#allocation3 + $0x18] sm:$0xff]  ;;  %v90_v6 = vld [vmem:[#allocation3 + $0x20] sm:$0xff]  ;;  %vm307_vm2 = vcmask 1045504   ;;  %vm647_vm3 = vcmask 516096   ;;  %vm1921_vm4 = vmmov 0  }
  0x38   :  { %v1644_v5 = vpack.c.bf16 %v89_v4, %v88_v2  ;;  %v91_v7 = vld [vmem:[#allocation3 + $0x28] sm:$0xff]  ;;  %v112_v8 = vld [vmem:[#allocation3 + $0x40] sm:$0xff]  ;;  %v114_v14 = vld [vmem:[#allocation3 + $0x50] sm:$0xff]  ;;  %s1923_s14 = smov [#allocation9]  }
  0x39   :  { %1641 = vmatprep.subr.bf16.mxu0 %v1640_v3  ;;  %v113_v9 = vld [vmem:[#allocation3 + $0x48] sm:$0xff]  ;;  %v74_v10 = vld [vmem:[%s2290_s0] sm:$0xff]  ;;  %v1648_v15 = vpack.c.bf16 %v91_v7, %v90_v6  ;;  %v92_v16 = vld [vmem:[#allocation3 + $0x30] sm:$0xff]  ;;  %v1920_v7 = vmov 0.0|0.0   ;;  %s1219_s15 = sshll.u32 %s1923_s14, 4  ;;  %s1220_s15 = int_to_ptr.vmem [resolvable:$true] %s1219_s15 }
  0x3a   :  { %1643 = vmatpush3.bf16.msra.mxu0 %v1640_v3  ;;  %v1624_v11 = vpack.c.bf16 %v113_v9, %v112_v8  ;;  %v2029_v12 = vmax.f32 %v74_v10, 0.0  ;;  %v75_v13 = vld [vmem:[%s2290_s0 + $0x8] sm:$0xff]  ;;  %v115_v18 = vld [vmem:[#allocation3 + $0x58] sm:$0xff]  ;;  %v116_v21 = vld [vmem:[#allocation3 + $0x60] sm:$0xff]  ;;  %p1892_p11 = scmp.lt.s32.totalorder %s1220_s15, %s1220_s15 }
  0x3b   :  { %1645 = vmatprep.subr.bf16.mxu0 %v1644_v5  ;;  %v2034_v17 = vmax.f32 %v75_v13, 0.0  ;;  %v93_v19 = vld [vmem:[#allocation3 + $0x38] sm:$0xff]  ;;  %v1628_v20 = vpack.c.bf16 %v115_v18, %v114_v14  ;;  %v117_v22 = vld [vmem:[#allocation3 + $0x68] sm:$0xff]  ;;  %v118_v27 = vld [vmem:[#allocation3 + $0x70] sm:$0xff] }
  0x3c   :  { %1625 = vmatprep.subr.bf16.mxu1 %v1624_v11  ;;  %1422 = vmatprep.mubr.msk.f32.mxu0 %vm120_vm0, %v2029_v12  ;;  %v101_v23 = vrot.slane %v2029_v12, 1  ;;  %v1632_v25 = vpack.c.bf16 %v117_v22, %v116_v21  ;;  %v1652_v26 = vpack.c.bf16 %v93_v19, %v92_v16  ;;  %v119_v28 = vld [vmem:[#allocation3 + $0x78] sm:$0xff]  ;;  %v76_v30 = vld [vmem:[%s2290_s0 + $0x10] sm:$0x3]  ;;  %v319_v31 = vld [vmem:[#allocation3 + $0x80] sm:$0xff]  ;;  %v308_v48 = vrot.slane %v2029_v12, 2 }
  0x3d   :  { %1627 = vmatpush3.bf16.msra.mxu1 %v1624_v11  ;;  %v102_v24 = vrot.slane %v2034_v17, 1  ;;  %v320_v32 = vld [vmem:[#allocation3 + $0x88] sm:$0xff]  ;;  %v77_v33 = vld [vmem:[%s2290_s0 + $0x18] sm:$0xff]  ;;  %v78_v34 = vld [vmem:[%s2290_s0 + $0x20] sm:$0xff]  ;;  %v82_v35 = vmax.f32 %v76_v30, 0.0  ;;  %v1636_v36 = vpack.c.bf16 %v119_v28, %v118_v27  ;;  %v309_v49 = vrot.slane %v2034_v17, 2 }
  0x3e   :  { %1647 = vmatpush3.bf16.msra.mxu0 %v1644_v5  ;;  %1629 = vmatprep.subr.bf16.mxu1 %v1628_v20  ;;  %v79_v37 = vld [vmem:[%s2290_s0 + $0x28] sm:$0x3]  ;;  %v1656_v38 = vpack.c.bf16 %v320_v32, %v319_v31  ;;  %v321_v39 = vld [vmem:[#allocation3 + $0x90] sm:$0xff]  ;;  %v322_v40 = vld [vmem:[#allocation3 + $0x98] sm:$0xff]  ;;  %v83_v41 = vmax.f32 %v77_v33, 0.0  ;;  %v84_v42 = vmax.f32 %v78_v34, 0.0 }
  0x3f   :  { %1649 = vmatprep.subr.bf16.mxu0 %v1648_v15  ;;  %v103_v29 = vsel %vm100_vm1, %v101_v23, %v102_v24  ;;  %v104_v43 = vrot.slane %v82_v35, 1  ;;  %v85_v44 = vmax.f32 %v79_v37, 0.0  ;;  %v1660_v47 = vpack.c.bf16 %v322_v40, %v321_v39  ;;  %v323_v50 = vld [vmem:[#allocation3 + $0xa0] sm:$0xff]  ;;  %v324_v51 = vld [vmem:[#allocation3 + $0xa8] sm:$0xff]  ;;  %v325_v57 = vld [vmem:[#allocation3 + $0xb0] sm:$0xff] }
  0x40   :  { %1400 = vmatprep.mubr.msk.f32.mxu1 %vm120_vm0, %v103_v29  ;;  %v106_v45 = vrot.slane %v83_v41, 1  ;;  %v107_v46 = vrot.slane %v84_v42, 1  ;;  %v1664_v55 = vpack.c.bf16 %v324_v51, %v323_v50  ;;  %v310_v56 = vsel %vm307_vm2, %v308_v48, %v309_v49  ;;  %v326_v58 = vld [vmem:[#allocation3 + $0xb8] sm:$0xff]  ;;  %v424_v4 = vld [vmem:[%s2292_s2] sm:$0xff]  ;;  %v425_v5 = vld [vmem:[%s2292_s2 + $0x8] sm:$0xff] }
  0x41   :  { %1631 = vmatpush3.bf16.msra.mxu1 %v1628_v20  ;;  %v105_v52 = vsel %vm100_vm1, %v102_v24, %v104_v43  ;;  %v109_v53 = vrot.slane %v85_v44, 1  ;;  %v1668_v60 = vpack.c.bf16 %v326_v58, %v325_v57  ;;  %v311_v61 = vrot.slane %v82_v35, 2  ;;  %v426_v8 = vld [vmem:[%s2292_s2 + $0x10] sm:$0xff]  ;;  %v427_v9 = vld [vmem:[%s2292_s2 + $0x18] sm:$0xff]  ;;  %v428_v11 = vld [vmem:[%s2292_s2 + $0x20] sm:$0xff] }
  0x42   :  { %1651 = vmatpush3.bf16.msra.mxu0 %v1648_v15  ;;  %1633 = vmatprep.subr.bf16.mxu1 %v1632_v25  ;;  %v108_v54 = vsel %vm100_vm1, %v106_v45, %v107_v46  ;;  %v313_v62 = vrot.slane %v83_v41, 2  ;;  %v314_v63 = vrot.slane %v84_v42, 2  ;;  %v316_v1 = vrot.slane %v85_v44, 2  ;;  %v429_v12 = vld [vmem:[%s2292_s2 + $0x28] sm:$0xff]  ;;  %v430_v14 = vld [vmem:[%s2292_s2 + $0x30] sm:$0xff]  ;;  %v431_v15 = vld [vmem:[%s2292_s2 + $0x38] sm:$0xff] }
  0x43   :  { %1653 = vmatprep.subr.bf16.mxu0 %v1652_v26  ;;  %v110_v59 = vsel %vm100_vm1, %v107_v46, %v109_v53  ;;  %v312_v0 = vsel %vm307_vm2, %v309_v49, %v311_v61  ;;  %v2080_v6 = vpack.c.bf16 %v425_v5, %v424_v4  ;;  %v2092_v10 = vpack.c.bf16 %v427_v9, %v426_v8  ;;  %v688_v61 = vld [vmem:[#allocation6 + $0x48] sm:$0xff]  ;;  %v693_v4 = vld [vmem:[#allocation6 + $0x70] sm:$0xff]  ;;  %v662_v9 = vld [vmem:[#allocation6] sm:$0xff] }
  0x44   :  { %v315_v2 = vsel %vm307_vm2, %v313_v62, %v314_v63  ;;  %v317_v3 = vsel %vm307_vm2, %v314_v63, %v316_v1  ;;  %v2102_v13 = vpack.c.bf16 %v429_v12, %v428_v11  ;;  %v1682_v16 = vpack.c.bf16 %v431_v15, %v430_v14  ;;  %v689_v63 = vld [vmem:[#allocation6 + $0x50] sm:$0xff]  ;;  %v997_v12 = vld [vmem:[#allocation8] sm:$0xff] }
  0x45   :  { %1635 = vmatpush3.bf16.msra.mxu1 %v1632_v25  ;;  %v999_v14 = vld [vmem:[#allocation8 + $0x10] sm:$0xff] }
  0x46   :  { %1655 = vmatpush3.bf16.msra.mxu0 %v1652_v26  ;;  %1637 = vmatprep.subr.bf16.mxu1 %v1636_v36 }
  0x47   :  { %1657 = vmatprep.subr.bf16.mxu0 %v1656_v38 }
  0x49   :  { %1423 = vmatmul.mubr.msk.f32.vlgmr.msra.gmra.mrb[0].mxu0 %vm120_vm0, %v2034_v17  ;;  %1639 = vmatpush3.bf16.msra.mxu1 %v1636_v36  ;;  %v1922_v17 = vmov 0.0  }
  0x4a   :  { %1659 = vmatpush3.bf16.msra.mxu0 %v1656_v38  ;;  %1425 = vmatprep.mubr.msk.f32.mxu0 %vm120_vm0, %v83_v41  ;;  %648 = vst.msk [vmem:[#allocation2] sm:$0x1] %vm647_vm3, %v1922_v17  ;;  %649 = vst.msk [vmem:[#allocation2 + $0x18] sm:$0x1] %vm647_vm3, %v1922_v17 }
  0x4b   :  { %1661 = vmatprep.subr.bf16.mxu0 %v1660_v47  ;;  %1672 = vmatprep.subr.bf16.mxu1 %v1920_v7  ;;  %650 = vst.msk [vmem:[#allocation2 + $0x11] sm:$0x1] %vm647_vm3, %v1922_v17  ;;  %651 = vst.msk [vmem:[#allocation2 + $0x29] sm:$0x1] %vm647_vm3, %v1922_v17 }
  0x4c   :  { %1401 = vmatmul.mubr.msk.f32.vlgmr.msra.gmra.mrb[0].mxu1 %vm120_vm0, %v105_v52 }
  0x4d   :  { %1426 = vmatmul.mubr.msk.f32.gmra.mrb[2].mxu0 %vm120_vm0, %v84_v42  ;;  %1403 = vmatprep.mubr.msk.f32.mxu1 %vm120_vm0, %v108_v54 }
  0x4e   :  { %1663 = vmatpush3.bf16.msra.mxu0 %v1660_v47  ;;  %1444 = vmatprep.mubr.msk.f32.mxu0 %vm120_vm0, %v310_v56 }
  0x4f   :  { %1665 = vmatprep.subr.bf16.mxu0 %v1664_v55  ;;  %1674 = vmatpush3.bf16.msra.mxu1 %v2080_v6 }
  0x50   :  { %1404 = vmatmul.mubr.msk.f32.gmra.mrb[2].mxu1 %vm120_vm0, %v110_v59  ;;  %1675 = vmatprep.subr.bf16.mxu1 %v1920_v7 }
  0x51   :  { %1466 = vmatprep.mubr.msk.f32.mxu1 %vm1921_vm4, %v1922_v17 }
  0x52   :  { %1667 = vmatpush3.bf16.msra.mxu0 %v1664_v55 }
  0x53   :  { %1669 = vmatprep.subr.bf16.mxu0 %v1668_v60  ;;  %1677 = vmatpush3.bf16.msra.mxu1 %v2092_v10 }
  0x54   :  { %1678 = vmatprep.subr.bf16.mxu1 %v1920_v7 }
  0x56   :  { %1671 = vmatpush3.bf16.msra.mxu0 %v1668_v60  ;;  %v687_v60 = vld [vmem:[#allocation6 + $0x40] sm:$0xff] }
  0x57   :  { %1744 = vmatprep.subr.bf16.mxu0 %v1920_v7  ;;  %1680 = vmatpush3.bf16.msra.mxu1 %v2102_v13  ;;  %v1696_v62 = vpack.c.bf16 %v688_v61, %v687_v60 }
  0x58   :  { %1681 = vmatprep.subr.bf16.mxu1 %v1920_v7 }
  0x59   :  { %1445 = vmatmul.mubr.msk.f32.vlgmr.msra.gmra.mrb[0].mxu0 %vm120_vm0, %v312_v0  ;;  %v690_v0 = vld [vmem:[#allocation6 + $0x58] sm:$0xff] }
  0x5a   :  { %1447 = vmatprep.mubr.msk.f32.mxu0 %vm120_vm0, %v315_v2  ;;  %v1700_v1 = vpack.c.bf16 %v690_v0, %v689_v63  ;;  %v691_v2 = vld [vmem:[#allocation6 + $0x60] sm:$0xff] }
  0x5b   :  { %1683 = vmatpush3.bf16.msra.mxu1 %v1682_v16 }
  0x5c   :  { %1684 = vmatprep.subr.bf16.mxu1 %v1920_v7 }
  0x5d   :  { %1448 = vmatmul.mubr.msk.f32.gmra.mrb[2].mxu0 %vm120_vm0, %v317_v3  ;;  %v692_v3 = vld [vmem:[#allocation6 + $0x68] sm:$0xff] }
  0x5e   :  { %1586 = vmatprep.mubr.msk.f32.mxu0 %vm1921_vm4, %v1922_v17  ;;  %v1704_v5 = vpack.c.bf16 %v692_v3, %v691_v2 }
 0x11f   :  { %v1402_v18 = vpop.f32.mrb[0].mxu1 }
 0x120   :  { %v195_v19 = vpop.f32.mrb[1].mxu1 }
 0x123   :  { %v1405_v20 = vpop.f32.mrb[2].mxu1 }
 0x124   :  { %v205_v21 = vpop.f32.mrb[3].mxu1 }
 0x12c   :  { %v1446_v22 = vpop.f32.mrb[0].mxu0 }
 0x12d   :  { %v2121_v23 = vadd.f32 %v1446_v22, %v1402_v18  ;;  %v401_v24 = vpop.f32.mrb[1].mxu0 }
 0x12e   :  { %v2123_v25 = vadd.f32 %v401_v24, %v195_v19  ;;  %v1001_v19 = vld [vmem:[#allocation8 + $0x20] sm:$0xff] }
 0x12f   :  { %v520_v26 = vmul.f32 %v2121_v23, %v2121_v23  ;;  %v433_v27 = vsel %vm120_vm0, %v2121_v23, 0.0 }
 0x130   :  { %v432_v28 = vsel %vm120_vm0, %v2123_v25, 0.0  ;;  %v519_v29 = vmul.f32 %v2123_v25, %v2123_v25  ;;  %v1449_v30 = vpop.f32.mrb[2].mxu0 }
 0x131   :  { %v2133_v31 = vadd.f32 %v1449_v30, %v1405_v20  ;;  %v411_v32 = vpop.f32.mrb[3].mxu0  ;;  %v524_v33 = vsel %vm120_vm0, %v520_v26, 0.0  ;;  %v434_v36 = vadd.f32 %v433_v27, %v432_v28  ;;  %v1002_v20 = vld [vmem:[#allocation8 + $0x28] sm:$0xff] }
 0x132   :  { %v523_v34 = vsel %vm120_vm0, %v519_v29, 0.0  ;;  %v2137_v35 = vadd.f32 %v411_v32, %v205_v21  ;;  %v2169_v21 = vpack.c.bf16 %v1002_v20, %v1001_v19  ;;  %v616_v32 = vlaneseq  ;;  %v668_v19 = vld [vmem:[#allocation6 + $0x30] sm:$0xff]  ;;  %v669_v20 = vld [vmem:[#allocation6 + $0x38] sm:$0xff] }
 0x133   :  { %v525_v39 = vadd.f32 %v524_v33, %v523_v34  ;;  %v437_v41 = vsel %vm120_vm0, %v2133_v31, 0.0  ;;  %v522_v42 = vmul.f32 %v2133_v31, %v2133_v31 }
 0x134   :  { %v435_v37 = vsel %vm120_vm0, %v2137_v35, 0.0  ;;  %v521_v38 = vmul.f32 %v2137_v35, %v2137_v35 }
 0x135   :  { %v436_v40 = vadd.f32 %v435_v37, %v434_v36  ;;  %v528_v47 = vsel %vm120_vm0, %v522_v42, 0.0  ;;  %v617_v36 = vshrl.u32 %v616_v32, 7  ;;  %v897_v32 = vld [vmem:[#allocation6 + $0xa8] sm:$0xff] }
 0x136   :  { %v526_v43 = vsel %vm120_vm0, %v521_v38, 0.0 }
 0x137   :  { %v438_v44 = vadd.f32 %v437_v41, %v436_v40  ;;  %v527_v45 = vadd.f32 %v526_v43, %v525_v39  ;;  %v2174_v37 = vsub.s32 0, %v617_v36  ;;  %v614_v39 = vld [vmem:[%s2293_s3] sm:$0x1] }
 0x139   :  { %v439_v46 = vrot.slane %v438_v44, 4  ;;  %v529_v49 = vadd.f32 %v528_v47, %v527_v45  ;;  %v1246_v47 = vld [vmem:[%s2294_s4] ss:$0 sm:$0xff] }
 0x13b   :  { %v440_v48 = vadd.f32 %v439_v46, %v438_v44  ;;  %v530_v52 = vrot.slane %v529_v49, 4 }
 0x13d   :  { %v441_v50 = vrot.slane %v440_v48, 2  ;;  %v531_v55 = vadd.f32 %v530_v52, %v529_v49 }
 0x13f   :  { %v442_v51 = vadd.f32 %v441_v50, %v440_v48  ;;  %v532_v56 = vrot.slane %v531_v55, 2 }
 0x141   :  { %v443_v53 = vrot.slane %v442_v51, 1  ;;  %v533_v57 = vadd.f32 %v532_v56, %v531_v55 }
 0x143   :  { %v444_v54 = vadd.f32 %v443_v53, %v442_v51  ;;  %v534_v58 = vrot.slane %v533_v57, 1 }
 0x145   :  { %1467 = vmatmul.mubr.msk.f32.vlgmr.msra.gmra.mrb[4].mxu1 %vm120_vm0, %v444_v54  ;;  %v535_v59 = vadd.f32 %v534_v58, %v533_v57  ;;  %v665_v57 = vld [vmem:[#allocation6 + $0x18] sm:$0xff] }
 0x146   :  { %1686 = vmatpush3.bf16.msra.mxu1 %v2080_v6  ;;  %1485 = vmatprep.mubr.msk.f32.mxu1 %vm1921_vm4, %v1922_v17  ;;  %v694_v6 = vld [vmem:[#allocation6 + $0x78] sm:$0xff] }
 0x147   :  { %1687 = vmatprep.subr.bf16.mxu1 %v1920_v7  ;;  %v1708_v8 = vpack.c.bf16 %v694_v6, %v693_v4 }
 0x14a   :  { %1689 = vmatpush3.bf16.msra.mxu1 %v2092_v10  ;;  %v663_v10 = vld [vmem:[#allocation6 + $0x8] sm:$0xff] }
 0x14b   :  { %1690 = vmatprep.subr.bf16.mxu1 %v1920_v7  ;;  %v2159_v11 = vpack.c.bf16 %v663_v10, %v662_v9  ;;  %v666_v10 = vld [vmem:[#allocation6 + $0x20] sm:$0xff] }
 0x14e   :  { %1692 = vmatpush3.bf16.msra.mxu1 %v2102_v13  ;;  %v998_v13 = vld [vmem:[#allocation8 + $0x8] sm:$0xff] }
 0x14f   :  { %1693 = vmatprep.subr.bf16.mxu1 %v1920_v7  ;;  %v2162_v15 = vpack.c.bf16 %v998_v13, %v997_v12  ;;  %v667_v12 = vld [vmem:[#allocation6 + $0x28] sm:$0xff] }
 0x151   :  { %1746 = vmatpush3.bf16.msra.mxu0 %v2162_v15 }
 0x152   :  { %1695 = vmatpush3.bf16.msra.mxu1 %v1682_v16  ;;  %v1000_v16 = vld [vmem:[#allocation8 + $0x18] sm:$0xff]  ;;  %1747 = vmatprep.subr.bf16.mxu0 %v1920_v7 }
 0x153   :  { %1697 = vmatprep.subr.bf16.mxu1 %v1696_v62  ;;  %v2165_v18 = vpack.c.bf16 %v1000_v16, %v999_v14  ;;  %v1720_v14 = vpack.c.bf16 %v667_v12, %v666_v10 }
 0x155   :  { %1486 = vmatmul.mubr.msk.f32.vlgmr.msra.gmra.mrb[6].mxu1 %vm120_vm0, %v535_v59  ;;  %1749 = vmatpush3.bf16.msra.mxu0 %v2165_v18 }
 0x156   :  { %1699 = vmatpush3.bf16.msra.mxu1 %v1696_v62  ;;  %1750 = vmatprep.subr.bf16.mxu0 %v1920_v7 }
 0x157   :  { %1701 = vmatprep.subr.bf16.mxu1 %v1700_v1 }
 0x159   :  { %1752 = vmatpush3.bf16.msra.mxu0 %v2169_v21 }
 0x15a   :  { %1703 = vmatpush3.bf16.msra.mxu1 %v1700_v1  ;;  %1753 = vmatprep.subr.bf16.mxu0 %v1920_v7 }
 0x15b   :  { %1705 = vmatprep.subr.bf16.mxu1 %v1704_v5 }
 0x15e   :  { %1707 = vmatpush3.bf16.msra.mxu1 %v1704_v5 }
 0x15f   :  { %1709 = vmatprep.subr.bf16.mxu1 %v1708_v8 }
 0x162   :  { %1711 = vmatpush3.bf16.msra.mxu1 %v1708_v8 }
 0x163   :  { %1713 = vmatprep.subr.bf16.mxu1 %v2159_v11 }
 0x218   :  { %v514_v22 = vpop.f32.mrb[4].mxu1 }
 0x219   :  { %v1468_v24 = vpop.f32.mrb[5].mxu1  ;;  %v518_v26 = vmul.f32 0.001953125, %v514_v22  ;;  %v1724_v22 = vpack.c.bf16 %v669_v20, %v668_v19 }
 0x21a   :  { %v892_v24 = vld [vmem:[#allocation6 + $0x80] sm:$0xff] }
 0x21b   :  { %v610_v28 = vmul.f32 %v518_v26, %v518_v26  ;;  %v619_v38 = vrot.slane %v518_v26, %v2174_v37  ;;  %v893_v26 = vld [vmem:[#allocation6 + $0x88] sm:$0xff] }
 0x21d   :  { %v620_v42 = vsub.f32 %v2123_v25, %v619_v38  ;;  %v621_v43 = vsub.f32 %v2121_v23, %v619_v38  ;;  %v622_v44 = vsub.f32 %v2137_v35, %v619_v38  ;;  %v623_v45 = vsub.f32 %v2133_v31, %v619_v38  ;;  %v664_v31 = vld [vmem:[#allocation6 + $0x10] sm:$0xff] }
 0x21e   :  { %v1716_v8 = vpack.c.bf16 %v665_v57, %v664_v31  ;;  %v898_v38 = vld [vmem:[#allocation6 + $0xb0] sm:$0xff] }
 0x21f   :  { %v1011_v57 = vld [vmem:[#allocation8 + $0x70] sm:$0xff] }
 0x228   :  { %v605_v27 = vpop.f32.mrb[6].mxu1 }
 0x229   :  { %v609_v29 = vmul.f32 0.001953125, %v605_v27  ;;  %v1487_v30 = vpop.f32.mrb[7].mxu1  ;;  %v894_v27 = vld [vmem:[#allocation6 + $0x90] sm:$0xff] }
 0x22a   :  { %v896_v30 = vld [vmem:[#allocation6 + $0xa0] sm:$0xff] }
 0x22b   :  { %v611_v33 = vsub.f32 %v609_v29, %v610_v28  ;;  %v895_v28 = vld [vmem:[#allocation6 + $0x98] sm:$0xff]  ;;  %v1736_v36 = vpack.c.bf16 %v897_v32, %v896_v30 }
 0x22c   :  { %v1732_v29 = vpack.c.bf16 %v895_v28, %v894_v27 }
 0x22d   :  { %v612_v34 = vadd.f32 1e-05, %v611_v33 }
 0x22f   :  { %1817 = vrsqrt.f32 %v612_v34 }
 0x239   :  { %v1818_v40 = vpop.eup %1817 }
 0x23a   :  { %v615_v41 = vmul.f32 %v1818_v40, %v614_v39  ;;  %v899_v39 = vld [vmem:[#allocation6 + $0xb8] sm:$0xff] }
 0x23c   :  { %v627_v46 = vrot.slane %v615_v41, %v2174_v37  ;;  %v1740_v41 = vpack.c.bf16 %v899_v39, %v898_v38 }
 0x23e   :  { %v628_v48 = vmul.f32 %v627_v46, %v620_v42  ;;  %v629_v49 = vmul.f32 %v627_v46, %v621_v43  ;;  %v630_v50 = vmul.f32 %v627_v46, %v622_v44  ;;  %v631_v51 = vmul.f32 %v627_v46, %v623_v45 }
 0x240   :  { %v639_v52 = vadd.f32 %v1246_v47, %v628_v48  ;;  %v640_v53 = vadd.f32 %v1246_v47, %v629_v49  ;;  %v641_v54 = vadd.f32 %v1246_v47, %v630_v50  ;;  %v642_v25 = vadd.f32 %v1246_v47, %v631_v51  ;;  %v1003_v49 = vld [vmem:[#allocation8 + $0x30] sm:$0xff]  ;;  %v1004_v50 = vld [vmem:[#allocation8 + $0x38] sm:$0xff] }
 0x241   :  { %v1754_v51 = vpack.c.bf16 %v1004_v50, %v1003_v49 }
 0x242   :  { %v643_v55 = vmax.f32 %v639_v52, 0.0  ;;  %v644_v23 = vmax.f32 %v640_v53, 0.0  ;;  %v645_v56 = vmax.f32 %v641_v54, 0.0  ;;  %v646_v35 = vmax.f32 %v642_v25, 0.0  ;;  %v1005_v52 = vld [vmem:[#allocation8 + $0x40] sm:$0xff]  ;;  %v1006_v53 = vld [vmem:[#allocation8 + $0x48] sm:$0xff] }
 0x243   :  { %1755 = vmatpush3.bf16.msra.mxu0 %v1754_v51  ;;  %v1757_v54 = vpack.c.bf16 %v1006_v53, %v1005_v52  ;;  %v1007_v25 = vld [vmem:[#allocation8 + $0x50] sm:$0xff] }
 0x244   :  { %652 = vst.msk [vmem:[#allocation2 + $0x1] sm:$0xff] %vm120_vm0, %v643_v55  ;;  %653 = vst.msk [vmem:[#allocation2 + $0x9] sm:$0xff] %vm120_vm0, %v644_v23  ;;  %1756 = vmatprep.subr.bf16.mxu0 %v1920_v7  ;;  %v1008_v55 = vld [vmem:[#allocation8 + $0x58] sm:$0xff] }
 0x245   :  { %654 = vst.msk [vmem:[#allocation2 + $0x19] sm:$0xff] %vm120_vm0, %v645_v56  ;;  %655 = vst.msk [vmem:[#allocation2 + $0x21] sm:$0xff] %vm120_vm0, %v646_v35  ;;  %v1760_v23 = vpack.c.bf16 %v1008_v55, %v1007_v25  ;;  %v1009_v56 = vld [vmem:[#allocation8 + $0x60] sm:$0xff]  ;;  %v1010_v35 = vld [vmem:[#allocation8 + $0x68] sm:$0xff] }
 0x246   :  { %v1763_v31 = vpack.c.bf16 %v1010_v35, %v1009_v56 }
 0x247   :  { %1758 = vmatpush3.bf16.msra.mxu0 %v1757_v54 }
 0x248   :  { %1759 = vmatprep.subr.bf16.mxu0 %v1920_v7 }
 0x24b   :  { %v656_v58 = vld [vmem:[#allocation2] sm:$0xff]  ;;  %v2192_v59 = vld [vmem:[#allocation2 + $0x8] sm:$0xff]  ;;  %v2194_v60 = vld [vmem:[#allocation2 + $0x10] sm:$0x3]  ;;  %1761 = vmatpush3.bf16.msra.mxu0 %v1760_v23 }
 0x24c   :  { %v676_v61 = vrot.slane %v656_v58, 1  ;;  %v677_v62 = vrot.slane %v2192_v59, 1  ;;  %v679_v63 = vrot.slane %v2194_v60, 1  ;;  %v2198_v0 = vld [vmem:[#allocation2 + $0x18] sm:$0xff]  ;;  %v2200_v1 = vld [vmem:[#allocation2 + $0x20] sm:$0xff]  ;;  %v881_v33 = vrot.slane %v656_v58, 2  ;;  %1762 = vmatprep.subr.bf16.mxu0 %v1920_v7 }
 0x24d   :  { %v681_v2 = vrot.slane %v2198_v0, 1  ;;  %v682_v3 = vrot.slane %v2200_v1, 1  ;;  %v661_v4 = vld [vmem:[#allocation2 + $0x28] sm:$0x3]  ;;  %v882_v34 = vrot.slane %v2192_v59, 2  ;;  %v884_v42 = vrot.slane %v2194_v60, 2 }
 0x24e   :  { %v678_v5 = vsel %vm100_vm1, %v676_v61, %v677_v62  ;;  %v680_v6 = vsel %vm100_vm1, %v677_v62, %v679_v63  ;;  %v684_v9 = vrot.slane %v661_v4, 1  ;;  %v886_v43 = vrot.slane %v2198_v0, 2 }
 0x24f   :  { %1504 = vmatprep.mubr.msk.f32.mxu1 %vm120_vm0, %v678_v5  ;;  %v683_v13 = vsel %vm100_vm1, %v681_v2, %v682_v3  ;;  %v883_v40 = vsel %vm307_vm2, %v881_v33, %v882_v34  ;;  %v887_v44 = vrot.slane %v2200_v1, 2  ;;  %v885_v45 = vsel %vm307_vm2, %v882_v34, %v884_v42  ;;  %1764 = vmatpush3.bf16.msra.mxu0 %v1763_v31 }
 0x250   :  { %1505 = vmatmul.mubr.msk.f32.vlgmr.msra.gmra.mrb[8].mxu1 %vm120_vm0, %v680_v6  ;;  %v685_v16 = vsel %vm100_vm1, %v682_v3, %v684_v9  ;;  %v889_v46 = vrot.slane %v661_v4, 2  ;;  %1765 = vmatprep.subr.bf16.mxu0 %v1920_v7 }
 0x251   :  { %1715 = vmatpush3.bf16.msra.mxu1 %v2159_v11  ;;  %1507 = vmatprep.mubr.msk.f32.mxu1 %vm120_vm0, %v683_v13  ;;  %v1728_v11 = vpack.c.bf16 %v893_v26, %v892_v24  ;;  %v888_v47 = vsel %vm307_vm2, %v886_v43, %v887_v44 }
 0x252   :  { %1717 = vmatprep.subr.bf16.mxu1 %v1716_v8  ;;  %v890_v48 = vsel %vm307_vm2, %v887_v44, %v889_v46 }
 0x254   :  { %1508 = vmatmul.mubr.msk.f32.gmra.mrb[10].mxu1 %vm120_vm0, %v685_v16 }
 0x255   :  { %1719 = vmatpush3.bf16.msra.mxu1 %v1716_v8  ;;  %1526 = vmatprep.mubr.msk.f32.mxu1 %vm120_vm0, %v656_v58  ;;  %v1012_v58 = vld [vmem:[#allocation8 + $0x78] sm:$0xff] }
 0x256   :  { %1721 = vmatprep.subr.bf16.mxu1 %v1720_v14 }
 0x259   :  { %1723 = vmatpush3.bf16.msra.mxu1 %v1720_v14 }
 0x25a   :  { %1725 = vmatprep.subr.bf16.mxu1 %v1724_v22 }
 0x25d   :  { %1727 = vmatpush3.bf16.msra.mxu1 %v1724_v22 }
 0x25e   :  { %1729 = vmatprep.subr.bf16.mxu1 %v1728_v11 }
 0x260   :  { %1527 = vmatmul.mubr.msk.f32.vlgmr.msra.gmra.mrb[8].mxu1 %vm120_vm0, %v2192_v59  ;;  %v1766_v59 = vpack.c.bf16 %v1012_v58, %v1011_v57 }
 0x261   :  { %1529 = vmatprep.mubr.msk.f32.mxu1 %vm120_vm0, %v2198_v0  ;;  %1731 = vmatpush3.bf16.msra.mxu1 %v1728_v11 }
 0x262   :  { %1733 = vmatprep.subr.bf16.mxu1 %v1732_v29  ;;  %1767 = vmatpush3.bf16.msra.mxu0 %v1766_v59 }
 0x263   :  { %1768 = vmatprep.subr.bf16.mxu0 %v1920_v7 }
 0x264   :  { %1530 = vmatmul.mubr.msk.f32.gmra.mrb[10].mxu1 %vm120_vm0, %v2200_v1 }
 0x265   :  { %1735 = vmatpush3.bf16.msra.mxu1 %v1732_v29  ;;  %1548 = vmatprep.mubr.msk.f32.mxu1 %vm120_vm0, %v883_v40 }
 0x266   :  { %1737 = vmatprep.subr.bf16.mxu1 %v1736_v36 }
 0x269   :  { %1739 = vmatpush3.bf16.msra.mxu1 %v1736_v36 }
 0x26a   :  { %1741 = vmatprep.subr.bf16.mxu1 %v1740_v41 }
 0x26d   :  { %1743 = vmatpush3.bf16.msra.mxu1 %v1740_v41  ;;  %v1181_v41 = vld [vmem:[%s2297_s7] sm:$0x1]  ;;  %s1887_s7 = scalar_lea.vmem %s1220_s15, 512 }
 0x26e   :  { %p1888_p10 = scmp.ne.s32.totalorder %s1220_s15, %s1887_s7  ;;  %p1893_p12 = scmp.lt.s32.totalorder %s1887_s7, %s1887_s7 }
 0x270   :  { %1549 = vmatmul.mubr.msk.f32.vlgmr.msra.gmra.mrb[8].mxu1 %vm120_vm0, %v885_v45  ;;  %v1259_v45 = vld [vmem:[%s2298_s8] ss:$0 sm:$0xff]  ;;  %p1894_p13 = por %p1893_p12, %p1892_p11 }
 0x271   :  { %1551 = vmatprep.mubr.msk.f32.mxu1 %vm120_vm0, %v888_v47 }
 0x272   :  { %p1895_p0 = pnand %p1894_p13, %p1888_p10 }
 0x274   :  { %1552 = vmatmul.mubr.msk.f32.gmra.mrb[10].mxu1 %vm120_vm0, %v890_v48 }
 0x343   :  { %v2237_v60 = vpop.f32.mrb[8].mxu1 }
 0x344   :  { %v1094_v61 = vmul.f32 %v2237_v60, %v2237_v60  ;;  %v2241_v62 = vpop.f32.mrb[9].mxu1 }
 0x345   :  { %v1013_v63 = vadd.f32 %v2237_v60, %v2241_v62  ;;  %v1093_v0 = vmul.f32 %v2241_v62, %v2241_v62 }
 0x347   :  { %v1097_v1 = vadd.f32 %v1094_v61, %v1093_v0  ;;  %v2247_v2 = vpop.f32.mrb[10].mxu1 }
 0x348   :  { %v984_v3 = vpop.f32.mrb[11].mxu1  ;;  %v1096_v6 = vmul.f32 %v2247_v2, %v2247_v2 }
 0x349   :  { %v1014_v4 = vadd.f32 %v1013_v63, %v984_v3  ;;  %v1095_v5 = vmul.f32 %v984_v3, %v984_v3 }
 0x34b   :  { %v1015_v8 = vadd.f32 %v2247_v2, %v1014_v4  ;;  %v1098_v9 = vadd.f32 %v1097_v1, %v1095_v5 }
 0x34d   :  { %v1016_v10 = vrot.slane %v1015_v8, 4  ;;  %v1099_v12 = vadd.f32 %v1098_v9, %v1096_v6 }
 0x34f   :  { %v1017_v13 = vadd.f32 %v1016_v10, %v1015_v8  ;;  %v1100_v22 = vrot.slane %v1099_v12, 4 }
 0x351   :  { %v1018_v14 = vrot.slane %v1017_v13, 2  ;;  %v1101_v24 = vadd.f32 %v1100_v22, %v1099_v12 }
 0x353   :  { %v1019_v16 = vadd.f32 %v1018_v14, %v1017_v13 }
 0x355   :  { %v1020_v19 = vrot.slane %v1019_v16, 1 }
 0x357   :  { %v1021_v20 = vadd.f32 %v1020_v19, %v1019_v16 }
 0x359   :  { %1587 = vmatmul.mubr.f32.vlgmr.msra.gmra.mrb[4].mxu0 %v1021_v20 }
 0x35a   :  { %1770 = vmatpush3.bf16.msra.mxu0 %v2162_v15  ;;  %1621 = vmatprep.mubr.msk.f32.mxu0 %vm1921_vm4, %v1922_v17  ;;  %v1102_v15 = vrot.slane %v1101_v24, 2 }
 0x35b   :  { %1771 = vmatprep.subr.bf16.mxu0 %v1920_v7 }
 0x35c   :  { %v1103_v17 = vadd.f32 %v1102_v15, %v1101_v24 }
 0x35e   :  { %1773 = vmatpush3.bf16.msra.mxu0 %v2165_v18  ;;  %v1104_v18 = vrot.slane %v1103_v17, 1 }
 0x35f   :  { %1774 = vmatprep.subr.bf16.mxu0 %v1920_v7 }
 0x362   :  { %1776 = vmatpush3.bf16.msra.mxu0 %v2169_v21  ;;  %v1105_v21 = vadd.f32 %v1104_v18, %v1103_v17 }
 0x363   :  { %1777 = vmatprep.subr.bf16.mxu0 %v1920_v7 }
 0x366   :  { %1779 = vmatpush3.bf16.msra.mxu0 %v1754_v51 }
 0x367   :  { %1780 = vmatprep.subr.bf16.mxu0 %v1920_v7 }
 0x36a   :  { %1782 = vmatpush3.bf16.msra.mxu0 %v1757_v54 }
 0x36b   :  { %1783 = vmatprep.subr.bf16.mxu0 %v1920_v7 }
 0x36e   :  { %1785 = vmatpush3.bf16.msra.mxu0 %v1760_v23 }
 0x36f   :  { %1786 = vmatprep.subr.bf16.mxu0 %v1920_v7 }
 0x372   :  { %1788 = vmatpush3.bf16.msra.mxu0 %v1763_v31 }
 0x373   :  { %1789 = vmatprep.subr.bf16.mxu0 %v1920_v7 }
 0x376   :  { %1791 = vmatpush3.bf16.msra.mxu0 %v1766_v59 }
 0x379   :  { %1622 = vmatmul.mubr.f32.vlgmr.msra.gmra.mrb[6].mxu0 %v1105_v21 }
 0x42c   :  { %v1088_v26 = vpop.f32.mrb[4].mxu0 }
 0x42d   :  { %v1092_v11 = vmul.f32 0.001953125, %v1088_v26  ;;  %v1588_v27 = vpop.f32.mrb[5].mxu0 }
 0x42f   :  { %v1186_v28 = vrot.slane %v1092_v11, %v2174_v37  ;;  %v1177_v36 = vmul.f32 %v1092_v11, %v1092_v11 }
 0x431   :  { %v1187_v29 = vsub.f32 %v2241_v62, %v1186_v28  ;;  %v1188_v30 = vsub.f32 %v2237_v60, %v1186_v28  ;;  %v1189_v32 = vsub.f32 %v984_v3, %v1186_v28  ;;  %v1190_v33 = vsub.f32 %v2247_v2, %v1186_v28 }
 0x44c   :  { %v1172_v34 = vpop.f32.mrb[6].mxu0 }
 0x44d   :  { %v1176_v38 = vmul.f32 0.001953125, %v1172_v34  ;;  %v1623_v7 = vpop.f32.mrb[7].mxu0 }
 0x44f   :  { %v1178_v39 = vsub.f32 %v1176_v38, %v1177_v36 }
 0x451   :  { %v1179_v40 = vadd.f32 1e-05, %v1178_v39 }
 0x453   :  { %1819 = vrsqrt.f32 %v1179_v40 }
 0x45d   :  { %v1820_v42 = vpop.eup %1819 }
 0x45e   :  { %v1182_v43 = vmul.f32 %v1820_v42, %v1181_v41 }
 0x460   :  { %v1194_v44 = vrot.slane %v1182_v43, %v2174_v37 }
 0x462   :  { %v1195_v46 = vmul.f32 %v1194_v44, %v1187_v29  ;;  %v1196_v47 = vmul.f32 %v1194_v44, %v1188_v30  ;;  %v1197_v48 = vmul.f32 %v1194_v44, %v1189_v32  ;;  %v1198_v49 = vmul.f32 %v1194_v44, %v1190_v33 }
 0x464   :  { %v1206_v50 = vadd.f32 %v1259_v45, %v1195_v46  ;;  %v1207_v51 = vadd.f32 %v1259_v45, %v1196_v47  ;;  %v1208_v52 = vadd.f32 %v1259_v45, %v1197_v48  ;;  %v1209_v53 = vadd.f32 %v1259_v45, %v1198_v49 }
 0x466   :  { %1210 = vst [vmem:[#allocation9] sm:$0xff] %v1206_v50  ;;  %1211 = vst [vmem:[#allocation9 + $0x8] sm:$0xff] %v1207_v51 }
 0x467   :  { %1212 = vst [vmem:[#allocation9 + $0x10] sm:$0xff] %v1208_v52  ;;  %1213 = vst [vmem:[#allocation9 + $0x18] sm:$0xff] %v1209_v53 }
 0x468   :  { %1898 = shalt.err (!%p1895_p0)
}
 0x469   :  { %s1899_s16 = scalar_lea.hbm %s2299_s9, 512 }
 0x46a   :  { %p1900_p1 = scmp.ne.s32.totalorder %s2299_s9, %s1899_s16  ;;  %p1903_p2 = scmp.lt.u32.totalorder %s1899_s16, %s2299_s9 }
 0x46c   :  { %p1905_p3 = pnand %p1903_p2, %p1900_p1 }
 0x46e   :  { %1908 = shalt.err (!%p1905_p3)
}
 0x46f   :  { %1225 = dma.vmem_to_hbm [thread:$0]  %s1220_s15, 512, %s2299_s9, [#allocation5], %s1917_s21, %s1917_s21, %s1918_s22  }
 0x470   :  { %1913 = dma.done.wait [#allocation5], 512  }
 0x471   :  { %1914 = vsyncadd [#allocation5], 4294966784 }
 0x472   :  { %1229 = vsyncpa [#allocation4], 1 }
 0x473   :  { %1230 = vsyncpa [#allocation7], 1 }
 0x474   :  { %1231 = vsyncpa [#allocation5], 1 }

</bundles_post_ra>
